<compile_context>
chip_gen: v7x
topology: tpu7x:2x2x1
jax: 0.10.0
libtpu: 0.0.40
codegen_flags: <defaults>
</compile_context>

<pallas_src>
from functools import partial

import jax
import jax.numpy as jnp
from jax import lax
from jax.experimental import pallas as pl
from jax.experimental.pallas import tpu as pltpu

LPAD = 128  # lane halo (>= W + 1); 128 keeps the interior xpad write lane-aligned


def _tensorcores_per_chip():
    # v7x has 2 TensorCores per chip; v5e / v6e have 1.
    try:
        kind = jax.devices()[0].device_kind.lower()
        return 2 if "v7" in kind else 1
    except Exception:
        return 1


def _images_per_step(N, C, num_cores):
    """Images per grid step: fill the 8 sublanes of a vreg, but keep >=2
    parallel grid steps on multi-TensorCore chips when the batch allows it."""
    nb = min(N, max(1, 8 // max(1, C)))      # fill 8 sublanes
    if num_cores >= 2:
        nb = min(nb, max(1, N // 2))         # keep both v7x TensorCores busy
    while nb > 1 and N % nb != 0:            # keep the grid exact
        nb -= 1
    return nb


def prepare_classifier_params(conv_w, conv_b, dense_w, dense_b, x_shape):
    """One-time weight-layout transforms (hoisted out of the per-call path)."""
    N, C, H, W = x_shape
    n_out = dense_w.shape[0]
    assert dense_w.shape[1] == W, "nn.Linear acts on the trailing (W) dim"
    HW = H * W
    f32 = jnp.float32

    nb = _images_per_step(N, C, _tensorcores_per_chip())
    rows = nb * C

    # Conv weights: for each of the 9 taps (dy, dx), a per-image block-diagonal
    # (rows, rows) block; concatenated along K -> (rows, 9*rows). This lets ONE
    # matmul produce the conv pre-activation for all NB images in the slab.
    eye_nb = jnp.eye(nb, dtype=f32)
    taps = [conv_w[:, :, dy, dx].astype(f32) for dy in range(3) for dx in range(3)]
    w_conv = jnp.concatenate([jnp.kron(eye_nb, t) for t in taps], axis=1)
    b_conv = jnp.tile(conv_b.astype(f32), (nb,)).reshape(rows, 1)

    # Dense over the torch-trailing W axis folded into one block-diagonal
    # matmul: (H*W, H*n_out) = kron(I_H, dense_w.T); output columns are (h, o).
    # TODO(synk): this kron is only 1/H dense and grows as H^2 (VMEM + MXU K);
    # switch to a per-h (rows, W) @ (W, n_out) formulation if H grows large.
    w_dense = jnp.kron(jnp.eye(H, dtype=f32), dense_w.T.astype(f32))
    b_dense = jnp.tile(dense_b.astype(f32), (H,)).reshape(1, H * n_out)

    # dx-boundary masks (1.0 where the shifted tap stays inside the image row),
    # pre-broadcast to (rows, HW) so the kernel never re-emits iota/compares.
    col = jnp.arange(HW, dtype=jnp.int32) % W
    not_first = jnp.broadcast_to((col >= 1).astype(f32)[None, :], (rows, HW))
    not_last = jnp.broadcast_to((col <= W - 2).astype(f32)[None, :], (rows, HW))
    dx_masks = jnp.concatenate([not_first, not_last], axis=0)  # (2*rows, HW)

    return nb, w_conv, b_conv, w_dense, b_dense, dx_masks


@partial(jax.jit, static_argnames=("nb",))
def classifier_wrap_forward(x_nchw, w_conv, b_conv, w_dense, b_dense, dx_masks,
                            *, nb):
    """x_nchw: (N, C, H, W); prepared weights from prepare_classifier_params."""
    N, C, H, W = x_nchw.shape
    HW = H * W
    n_out = b_dense.shape[1] // H
    f32 = jnp.float32

    assert N % nb == 0
    steps = N // nb
    rows = nb * C  # sublanes per grid step (8 when nb*C == 8)

    # Layout plumbing only: one lane-dense (rows, HW) slab per grid step.
    x_slabs = x_nchw.reshape(steps, rows, HW)

    def kernel(x_ref, wc_ref, bc_ref, mdx_ref, wd_ref, bd_ref, o_ref,
               xpad_ref, xcol_ref):
        # x_ref:    (1, rows, HW)          nb images, lane-dense
        # wc_ref:   (rows, 9*rows)         per-tap block-diagonal conv weights
        # bc_ref:   (rows, 1)              conv bias (tiled over images)
        # mdx_ref:  (2*rows, HW)           dx-boundary masks (0/1 floats)
        # wd_ref:   (HW, H*n_out)          block-diagonal dense weights
        # bd_ref:   (1, H*n_out)           dense bias (tiled per h)
        # o_ref:    (1, rows, H*n_out)     lane-dense output block
        # xpad_ref: (rows, HW + 2*LPAD)    zero-halo scratch
        # xcol_ref: (9*rows, HW)           batched im2col matrix
        x2d = x_ref[0]  # (rows, HW)

        # In-kernel halo: only the halo is zeroed (interior is fully
        # overwritten next), halving the fill stores. Do NOT hoist this behind
        # pl.when while the grid axis is parallel (scratch is per-core).
        xpad_ref[:, :LPAD] = jnp.zeros((rows, LPAD), f32)
        xpad_ref[:, LPAD + HW:] = jnp.zeros((rows, LPAD), f32)
        xpad_ref[:, LPAD:LPAD + HW] = x2d

        nf = mdx_ref[0:rows, :]       # valid when dx offset = -1
        nl = mdx_ref[rows:2 * rows, :]  # valid when dx offset = +1

        # Batched im2col: each of the nine taps is one full-width (rows, HW)
        # window of the halo'd slab -> one full-sublane store per tap. Row
        # order is (tap, image, channel) to match wc_ref's column blocks.
        for k, (dy, dx) in enumerate([(a, b) for a in range(3) for b in range(3)]):
            shift = (dy - 1) * W + (dx - 1)
            win = xpad_ref[:, LPAD + shift:LPAD + shift + HW]  # (rows, HW)
            if dx == 0:
                win = win * nf
            elif dx == 2:
                win = win * nl
            xcol_ref[k * rows:(k + 1) * rows, :] = win

        # One fused conv matmul for all images: (rows, 9*rows) @ (9*rows, HW).
        g = jnp.dot(wc_ref[...], xcol_ref[...],
                    preferred_element_type=jnp.float32) + bc_ref[...]

        # core: self-attention gate, then SiLU — batched elementwise.
        y = x2d * jax.nn.sigmoid(g)   # x * sigmoid(conv(x))
        z = y * jax.nn.sigmoid(y)     # F.silu(y)

        # Dense over the torch-trailing W axis as one block-diagonal matmul:
        # (rows, HW) @ (HW, H*n_out) -> (rows, H*n_out); full-width store.
        out = jnp.dot(z, wd_ref[...], preferred_element_type=jnp.float32)
        o_ref[0] = (out + bd_ref[...]).astype(o_ref.dtype)

    out_slabs = pl.pallas_call(
        kernel,
        out_shape=jax.ShapeDtypeStruct((steps, rows, H * n_out), x_nchw.dtype),
        grid_spec=pltpu.PrefetchScalarGridSpec(
            num_scalar_prefetch=0,
            grid=(steps,),
            in_specs=[
                pl.BlockSpec((1, rows, HW), lambda n: (n, 0, 0)),
                pl.BlockSpec((rows, 9 * rows), lambda n: (0, 0)),
                pl.BlockSpec((rows, 1), lambda n: (0, 0)),
                pl.BlockSpec((2 * rows, HW), lambda n: (0, 0)),
                pl.BlockSpec((HW, H * n_out), lambda n: (0, 0)),
                pl.BlockSpec((1, H * n_out), lambda n: (0, 0)),
            ],
            out_specs=pl.BlockSpec((1, rows, H * n_out), lambda n: (n, 0, 0)),
            scratch_shapes=[
                pltpu.VMEM((rows, HW + 2 * LPAD), f32),   # zero-halo slab
                pltpu.VMEM((9 * rows, HW), f32),          # batched im2col
            ],
        ),
        compiler_params=pltpu.CompilerParams(
            dimension_semantics=("parallel",),
        ),
    )(x_slabs, w_conv, b_conv, dx_masks, w_dense, b_dense)

    # Layout plumbing back to torch semantics: (steps, rows, H*n_out) ->
    # (N, C, H, n_out).
    return out_slabs.reshape(N, C, H, n_out)


def _reference(x, conv_w, conv_b, dense_w, dense_b):
    """Pure-JAX reference for ClassifierWrap(core=SelfAttentionGate)."""
    g = lax.conv_general_dilated(
        x, conv_w, window_strides=(1, 1), padding="SAME",
        dimension_numbers=("NCHW", "OIHW", "NCHW"),
    ) + conv_b[None, :, None, None]
    y = x * jax.nn.sigmoid(g)                       # core
    z = y * jax.nn.sigmoid(y)                       # F.silu
    return jnp.einsum("nchw,ow->ncho", z, dense_w) + dense_b  # nn.Linear on last dim


if __name__ == "__main__":
    # Small shapes consistent with the module: batch=2, channels=4, spatial=16,
    # emb_dim = trailing dim = 16, n_out = 8.
    N, C, H, W = 2, 4, 16, 16
    n_out = 8

    key = jax.random.PRNGKey(0)
    kx, kcw, kcb, kdw, kdb = jax.random.split(key, 5)

    x_nchw = jax.random.normal(kx, (N, C, H, W), dtype=jnp.float32)

    conv_fan_in = C * 3 * 3
    cb = 1.0 / (conv_fan_in ** 0.5)
    conv_w = jax.random.uniform(kcw, (C, C, 3, 3), minval=-cb, maxval=cb,
                                dtype=jnp.float32)
    conv_b = jax.random.uniform(kcb, (C,), minval=-cb, maxval=cb, dtype=jnp.float32)

    db = 1.0 / (W ** 0.5)
    dense_w = jax.random.uniform(kdw, (n_out, W), minval=-db, maxval=db,
                                 dtype=jnp.float32)
    dense_b = jax.random.uniform(kdb, (n_out,), minval=-db, maxval=db,
                                 dtype=jnp.float32)

    # One-time weight-layout prep (hoisted out of the per-call path).
    nb, w_conv_p, b_conv_p, w_dense_p, b_dense_p, dx_masks = (
        prepare_classifier_params(conv_w, conv_b, dense_w, dense_b,
                                  (N, C, H, W)))

    out = classifier_wrap_forward(x_nchw, w_conv_p, b_conv_p, w_dense_p,
                                  b_dense_p, dx_masks, nb=nb)
    out = jax.block_until_ready(out)

    ref = _reference(x_nchw, conv_w, conv_b, dense_w, dense_b)
    assert out.shape == (N, C, H, n_out)
    assert jnp.allclose(out, ref, atol=1e-5, rtol=1e-5)

    print("KERNEL_OK")
</pallas_src>

<mosaic_0001>
module attributes {stable_mosaic.version = 11 : i64} {
  func.func @kernel(%arg0: i32, %arg1: memref<1x8x256xf32, #tpu.memory_space<vmem>>, %arg2: memref<8x72xf32, #tpu.memory_space<vmem>>, %arg3: memref<8x1xf32, #tpu.memory_space<vmem>>, %arg4: memref<16x256xf32, #tpu.memory_space<vmem>>, %arg5: memref<256x128xf32, #tpu.memory_space<vmem>>, %arg6: memref<1x128xf32, #tpu.memory_space<vmem>>, %arg7: memref<1x8x128xf32, #tpu.memory_space<vmem>>, %arg8: memref<8x512xf32, #tpu.memory_space<vmem>>, %arg9: memref<72x256xf32, #tpu.memory_space<vmem>>) attributes {dimension_semantics = [#tpu.dimension_semantics<parallel>], iteration_bounds = array<i64: 1>, scalar_prefetch = 0 : i64, scratch_operands = 2 : i64, tpu.core_type = #tpu.core_type<tc>, window_params = [{transform_indices = @transform_0, window_bounds = array<i64: 1, 8, 256>}, {pipeline_mode = #tpu.pipeline_mode<synchronous>, transform_indices = @transform_1, window_bounds = array<i64: 8, 72>}, {pipeline_mode = #tpu.pipeline_mode<synchronous>, transform_indices = @transform_2, window_bounds = array<i64: 8, 1>}, {pipeline_mode = #tpu.pipeline_mode<synchronous>, transform_indices = @transform_3, window_bounds = array<i64: 16, 256>}, {pipeline_mode = #tpu.pipeline_mode<synchronous>, transform_indices = @transform_4, window_bounds = array<i64: 256, 128>}, {pipeline_mode = #tpu.pipeline_mode<synchronous>, transform_indices = @transform_5, window_bounds = array<i64: 1, 128>}, {transform_indices = @transform_6, window_bounds = array<i64: 1, 8, 128>}]} {
    %c0 = arith.constant 0 : index
    %c0_0 = arith.constant 0 : index
    %c0_1 = arith.constant 0 : index
    %0 = vector.load %arg1[%c0, %c0_0, %c0_1] : memref<1x8x256xf32, #tpu.memory_space<vmem>>, vector<1x8x256xf32>
    %1 = vector.shape_cast %0 : vector<1x8x256xf32> to vector<8x256xf32>
    %cst = arith.constant 0.000000e+00 : f32
    %2 = vector.broadcast %cst : f32 to vector<8x128xf32>
    %c0_2 = arith.constant 0 : index
    %c0_3 = arith.constant 0 : index
    %3 = vector.load %arg8[%c0_2, %c0_3] : memref<8x512xf32, #tpu.memory_space<vmem>>, vector<8x128xf32>
    tpu.vector_store %arg8[%c0_2, %c0_3], %2 {strides = array<i32>} : memref<8x512xf32, #tpu.memory_space<vmem>>, vector<8x128xf32>,
    %cst_4 = arith.constant 0.000000e+00 : f32
    %4 = vector.broadcast %cst_4 : f32 to vector<8x128xf32>
    %c0_5 = arith.constant 0 : index
    %c384 = arith.constant 384 : index
    %5 = vector.load %arg8[%c0_5, %c384] : memref<8x512xf32, #tpu.memory_space<vmem>>, vector<8x128xf32>
    tpu.vector_store %arg8[%c0_5, %c384], %4 {strides = array<i32>} : memref<8x512xf32, #tpu.memory_space<vmem>>, vector<8x128xf32>,
    %c0_6 = arith.constant 0 : index
    %c128 = arith.constant 128 : index
    %6 = vector.load %arg8[%c0_6, %c128] : memref<8x512xf32, #tpu.memory_space<vmem>>, vector<8x256xf32>
    tpu.vector_store %arg8[%c0_6, %c128], %1 {strides = array<i32>} : memref<8x512xf32, #tpu.memory_space<vmem>>, vector<8x256xf32>,
    %c0_7 = arith.constant 0 : index
    %c0_8 = arith.constant 0 : index
    %7 = vector.load %arg4[%c0_7, %c0_8] : memref<16x256xf32, #tpu.memory_space<vmem>>, vector<8x256xf32>
    %c8 = arith.constant 8 : index
    %c0_9 = arith.constant 0 : index
    %8 = vector.load %arg4[%c8, %c0_9] : memref<16x256xf32, #tpu.memory_space<vmem>>, vector<8x256xf32>
    %c0_10 = arith.constant 0 : index
    %c111 = arith.constant 111 : index
    %9 = vector.load %arg8[%c0_10, %c111] : memref<8x512xf32, #tpu.memory_space<vmem>>, vector<8x256xf32>
    %10 = arith.mulf %9, %7 : vector<8x256xf32>
    %c0_11 = arith.constant 0 : index
    %c0_12 = arith.constant 0 : index
    %11 = vector.load %arg9[%c0_11, %c0_12] : memref<72x256xf32, #tpu.memory_space<vmem>>, vector<8x256xf32>
    tpu.vector_store %arg9[%c0_11, %c0_12], %10 {strides = array<i32>} : memref<72x256xf32, #tpu.memory_space<vmem>>, vector<8x256xf32>,
    %c0_13 = arith.constant 0 : index
    %c112 = arith.constant 112 : index
    %12 = vector.load %arg8[%c0_13, %c112] : memref<8x512xf32, #tpu.memory_space<vmem>>, vector<8x256xf32>
    %c8_14 = arith.constant 8 : index
    %c0_15 = arith.constant 0 : index
    %13 = vector.load %arg9[%c8_14, %c0_15] : memref<72x256xf32, #tpu.memory_space<vmem>>, vector<8x256xf32>
    tpu.vector_store %arg9[%c8_14, %c0_15], %12 {strides = array<i32>} : memref<72x256xf32, #tpu.memory_space<vmem>>, vector<8x256xf32>,
    %c0_16 = arith.constant 0 : index
    %c113 = arith.constant 113 : index
    %14 = vector.load %arg8[%c0_16, %c113] : memref<8x512xf32, #tpu.memory_space<vmem>>, vector<8x256xf32>
    %15 = arith.mulf %14, %8 : vector<8x256xf32>
    %c16 = arith.constant 16 : index
    %c0_17 = arith.constant 0 : index
    %16 = vector.load %arg9[%c16, %c0_17] : memref<72x256xf32, #tpu.memory_space<vmem>>, vector<8x256xf32>
    tpu.vector_store %arg9[%c16, %c0_17], %15 {strides = array<i32>} : memref<72x256xf32, #tpu.memory_space<vmem>>, vector<8x256xf32>,
    %c0_18 = arith.constant 0 : index
    %c127 = arith.constant 127 : index
    %17 = vector.load %arg8[%c0_18, %c127] : memref<8x512xf32, #tpu.memory_space<vmem>>, vector<8x256xf32>
    %18 = arith.mulf %17, %7 : vector<8x256xf32>
    %c24 = arith.constant 24 : index
    %c0_19 = arith.constant 0 : index
    %19 = vector.load %arg9[%c24, %c0_19] : memref<72x256xf32, #tpu.memory_space<vmem>>, vector<8x256xf32>
    tpu.vector_store %arg9[%c24, %c0_19], %18 {strides = array<i32>} : memref<72x256xf32, #tpu.memory_space<vmem>>, vector<8x256xf32>,
    %c0_20 = arith.constant 0 : index
    %c128_21 = arith.constant 128 : index
    %20 = vector.load %arg8[%c0_20, %c128_21] : memref<8x512xf32, #tpu.memory_space<vmem>>, vector<8x256xf32>
    %c32 = arith.constant 32 : index
    %c0_22 = arith.constant 0 : index
    %21 = vector.load %arg9[%c32, %c0_22] : memref<72x256xf32, #tpu.memory_space<vmem>>, vector<8x256xf32>
    tpu.vector_store %arg9[%c32, %c0_22], %20 {strides = array<i32>} : memref<72x256xf32, #tpu.memory_space<vmem>>, vector<8x256xf32>,
    %c0_23 = arith.constant 0 : index
    %c129 = arith.constant 129 : index
    %22 = vector.load %arg8[%c0_23, %c129] : memref<8x512xf32, #tpu.memory_space<vmem>>, vector<8x256xf32>
    %23 = arith.mulf %22, %8 : vector<8x256xf32>
    %c40 = arith.constant 40 : index
    %c0_24 = arith.constant 0 : index
    %24 = vector.load %arg9[%c40, %c0_24] : memref<72x256xf32, #tpu.memory_space<vmem>>, vector<8x256xf32>
    tpu.vector_store %arg9[%c40, %c0_24], %23 {strides = array<i32>} : memref<72x256xf32, #tpu.memory_space<vmem>>, vector<8x256xf32>,
    %c0_25 = arith.constant 0 : index
    %c143 = arith.constant 143 : index
    %25 = vector.load %arg8[%c0_25, %c143] : memref<8x512xf32, #tpu.memory_space<vmem>>, vector<8x256xf32>
    %26 = arith.mulf %25, %7 : vector<8x256xf32>
    %c48 = arith.constant 48 : index
    %c0_26 = arith.constant 0 : index
    %27 = vector.load %arg9[%c48, %c0_26] : memref<72x256xf32, #tpu.memory_space<vmem>>, vector<8x256xf32>
    tpu.vector_store %arg9[%c48, %c0_26], %26 {strides = array<i32>} : memref<72x256xf32, #tpu.memory_space<vmem>>, vector<8x256xf32>,
    %c0_27 = arith.constant 0 : index
    %c144 = arith.constant 144 : index
    %28 = vector.load %arg8[%c0_27, %c144] : memref<8x512xf32, #tpu.memory_space<vmem>>, vector<8x256xf32>
    %c56 = arith.constant 56 : index
    %c0_28 = arith.constant 0 : index
    %29 = vector.load %arg9[%c56, %c0_28] : memref<72x256xf32, #tpu.memory_space<vmem>>, vector<8x256xf32>
    tpu.vector_store %arg9[%c56, %c0_28], %28 {strides = array<i32>} : memref<72x256xf32, #tpu.memory_space<vmem>>, vector<8x256xf32>,
    %c0_29 = arith.constant 0 : index
    %c145 = arith.constant 145 : index
    %30 = vector.load %arg8[%c0_29, %c145] : memref<8x512xf32, #tpu.memory_space<vmem>>, vector<8x256xf32>
    %31 = arith.mulf %30, %8 : vector<8x256xf32>
    %c64 = arith.constant 64 : index
    %c0_30 = arith.constant 0 : index
    %32 = vector.load %arg9[%c64, %c0_30] : memref<72x256xf32, #tpu.memory_space<vmem>>, vector<8x256xf32>
    tpu.vector_store %arg9[%c64, %c0_30], %31 {strides = array<i32>} : memref<72x256xf32, #tpu.memory_space<vmem>>, vector<8x256xf32>,
    %c0_31 = arith.constant 0 : index
    %c0_32 = arith.constant 0 : index
    %33 = vector.load %arg2[%c0_31, %c0_32] : memref<8x72xf32, #tpu.memory_space<vmem>>, vector<8x72xf32>
    %c0_33 = arith.constant 0 : index
    %c0_34 = arith.constant 0 : index
    %34 = vector.load %arg9[%c0_33, %c0_34] : memref<72x256xf32, #tpu.memory_space<vmem>>, vector<72x256xf32>
    %cst_35 = arith.constant dense<0.000000e+00> : vector<8x256xf32>
    %35 = tpu.matmul %33, %34, %cst_35 {dimension_numbers = #tpu.dot_dimension_numbers<[1], [0], [0], [1], [0, 0, 1, 1], [], []>} : vector<8x72xf32>, vector<72x256xf32>, vector<8x256xf32> -> vector<8x256xf32>
    %c0_36 = arith.constant 0 : index
    %c0_37 = arith.constant 0 : index
    %36 = vector.load %arg3[%c0_36, %c0_37] : memref<8x1xf32, #tpu.memory_space<vmem>>, vector<8x1xf32>
    %37 = vector.broadcast %36 : vector<8x1xf32> to vector<8x256xf32>
    %38 = arith.addf %35, %37 : vector<8x256xf32>
    %39 = arith.negf %38 : vector<8x256xf32>
    %40 = math.exp %39 : vector<8x256xf32>
    %cst_38 = arith.constant 1.000000e+00 : f32
    %41 = vector.broadcast %cst_38 : f32 to vector<8x256xf32>
    %42 = arith.addf %41, %40 : vector<8x256xf32>
    %43 = arith.divf %41, %42 : vector<8x256xf32>
    %44 = arith.mulf %1, %43 : vector<8x256xf32>
    %45 = arith.negf %44 : vector<8x256xf32>
    %46 = math.exp %45 : vector<8x256xf32>
    %cst_39 = arith.constant 1.000000e+00 : f32
    %47 = vector.broadcast %cst_39 : f32 to vector<8x256xf32>
    %48 = arith.addf %47, %46 : vector<8x256xf32>
    %49 = arith.divf %47, %48 : vector<8x256xf32>
    %50 = arith.mulf %44, %49 : vector<8x256xf32>
    %c0_40 = arith.constant 0 : index
    %c0_41 = arith.constant 0 : index
    %51 = vector.load %arg5[%c0_40, %c0_41] : memref<256x128xf32, #tpu.memory_space<vmem>>, vector<256x128xf32>
    %cst_42 = arith.constant dense<0.000000e+00> : vector<8x128xf32>
    %52 = tpu.matmul %50, %51, %cst_42 {dimension_numbers = #tpu.dot_dimension_numbers<[1], [0], [0], [1], [0, 0, 1, 1], [], []>} : vector<8x256xf32>, vector<256x128xf32>, vector<8x128xf32> -> vector<8x128xf32>
    %c0_43 = arith.constant 0 : index
    %c0_44 = arith.constant 0 : index
    %53 = vector.load %arg6[%c0_43, %c0_44] : memref<1x128xf32, #tpu.memory_space<vmem>>, vector<1x128xf32>
    %54 = vector.broadcast %53 : vector<1x128xf32> to vector<8x128xf32>
    %55 = arith.addf %52, %54 : vector<8x128xf32>
    %c0_45 = arith.constant 0 : index
    %c0_46 = arith.constant 0 : index
    %c0_47 = arith.constant 0 : index
    %56 = vector.load %arg7[%c0_45, %c0_46, %c0_47] : memref<1x8x128xf32, #tpu.memory_space<vmem>>, vector<1x8x128xf32>
    %57 = vector.shape_cast %56 : vector<1x8x128xf32> to vector<8x128xf32>
    %58 = vector.shape_cast %55 : vector<8x128xf32> to vector<1x8x128xf32>
    tpu.vector_store %arg7[%c0_45, %c0_46, %c0_47], %58 {strides = array<i32>} : memref<1x8x128xf32, #tpu.memory_space<vmem>>, vector<1x8x128xf32>,
    return
  }
  func.func @transform_0(%arg0: i32) -> (i32, i32, i32) {
    %c0_i32 = arith.constant 0 : i32
    %c0_i32_0 = arith.constant 0 : i32
    %c0_i32_1 = arith.constant 0 : i32
    return %arg0, %c0_i32, %c0_i32_0 : i32, i32, i32
  }
  func.func @transform_1(%arg0: i32) -> (i32, i32) {
    %c0_i32 = arith.constant 0 : i32
    %c0_i32_0 = arith.constant 0 : i32
    %c0_i32_1 = arith.constant 0 : i32
    return %c0_i32, %c0_i32_0 : i32, i32
  }
  func.func @transform_2(%arg0: i32) -> (i32, i32) {
    %c0_i32 = arith.constant 0 : i32
    %c0_i32_0 = arith.constant 0 : i32
    %c0_i32_1 = arith.constant 0 : i32
    return %c0_i32, %c0_i32_0 : i32, i32
  }
  func.func @transform_3(%arg0: i32) -> (i32, i32) {
    %c0_i32 = arith.constant 0 : i32
    %c0_i32_0 = arith.constant 0 : i32
    %c0_i32_1 = arith.constant 0 : i32
    return %c0_i32, %c0_i32_0 : i32, i32
  }
  func.func @transform_4(%arg0: i32) -> (i32, i32) {
    %c0_i32 = arith.constant 0 : i32
    %c0_i32_0 = arith.constant 0 : i32
    %c0_i32_1 = arith.constant 0 : i32
    return %c0_i32, %c0_i32_0 : i32, i32
  }
  func.func @transform_5(%arg0: i32) -> (i32, i32) {
    %c0_i32 = arith.constant 0 : i32
    %c0_i32_0 = arith.constant 0 : i32
    %c0_i32_1 = arith.constant 0 : i32
    return %c0_i32, %c0_i32_0 : i32, i32
  }
  func.func @transform_6(%arg0: i32) -> (i32, i32, i32) {
    %c0_i32 = arith.constant 0 : i32
    %c0_i32_0 = arith.constant 0 : i32
    %c0_i32_1 = arith.constant 0 : i32
    return %arg0, %c0_i32, %c0_i32_0 : i32, i32, i32
  }
}

</mosaic_0001>

<bundles_post_ra>
// kernel: classifier_wrap_forward.1
= control target key start
LH: loop header
LB: loop body
LE: loop exit
PB: predicated region body
PF: predicated region fallthrough
CT: control target
= control target key end

     0   :  { %11 = vsyncpa [#allocation5], 0  ;;  %s695_s21 = smov [#allocation4]   ;;  %s855_s0 = inlined_call_operand.vmem [shape: f32[1,8,256], index: 0, kind: input, shape index: {}]   ;;  %s856_s1 = inlined_call_operand.vmem [shape: f32[8,72], index: 1, kind: input, shape index: {}]   ;;  %s857_s2 = inlined_call_operand.vmem [shape: f32[8,1], index: 2, kind: input, shape index: {}]   ;;  %s858_s3 = inlined_call_operand.vmem [shape: f32[16,256], index: 3, kind: input, shape index: {}]   ;;  %s859_s4 = inlined_call_operand.hbm [shape: f32[256,128], index: 4, kind: input, shape index: {}]   ;;  %s860_s5 = inlined_call_operand.vmem [shape: f32[1,128], index: 5, kind: input, shape index: {}]   ;;  %s861_s6 = inlined_call_operand.vmem [shape: f32[1,8,128], index: 6, kind: output, shape index: {}]  }
   0x1   :  { %s25_s22 = sshll.u32 %s695_s21, 4  ;;  %s671_s25 = scalar_lea.hbm %s859_s4, 4096  ;;  %s26_s22 = int_to_ptr.vmem [resolvable:$true] %s25_s22 }
   0x2   :  { %p672_p0 = scmp.ne.s32.totalorder %s859_s4, %s671_s25  ;;  %p675_p1 = scmp.lt.u32.totalorder %s671_s25, %s859_s4 }
   0x4   :  { %p677_p2 = pnand %p675_p1, %p672_p0 }
   0x6   :  { %680 = shalt.err (!%p677_p2)
}
   0x7   :  { %s681_s30 = scalar_lea.vmem %s26_s22, 4096  ;;  %p686_p4 = scmp.lt.s32.totalorder %s26_s22, %s26_s22 }
   0x8   :  { %p682_p3 = scmp.ne.s32.totalorder %s26_s22, %s681_s30  ;;  %p687_p5 = scmp.lt.s32.totalorder %s681_s30, %s681_s30 }
   0xa   :  { %p688_p6 = por %p687_p5, %p686_p4 }
   0xc   :  { %p689_p7 = pnand %p688_p6, %p682_p3 }
   0xe   :  { %692 = shalt.err (!%p689_p7)
}
   0xf   :  { %s696_s7 = smov 128   ;;  %s697_s8 = smov 8  }
  0x10   :  { %31 = dma.hbm_to_vmem [thread:$0]  %s859_s4, 4096, %s26_s22, [#allocation5], %s696_s7, %s696_s7, %s697_s8  }
  0x11   :  { %693 = dma.done.wait [#allocation5], 4096  }
  0x12   :  { %694 = vsyncadd [#allocation5], 4294963200  ;;  %v698_v0 = vmov 0.0   ;;  %v45_v1 = vld [vmem:[%s858_s3 + $0x10] sm:$0xff]  ;;  %v43_v2 = vld [vmem:[%s858_s3] sm:$0xff]  ;;  %s699_s15 = smov 113  }
  0x13   :  { %366 = vmatprep.mubr.f32.mxu0 %v698_v0  ;;  %104 = vrot.lane.b32.xlu1 %v45_v1, %s699_s15  ;;  %s700_s16 = smov 111   ;;  %v46_v3 = vld [vmem:[%s858_s3 + $0x18] sm:$0xff]  ;;  %v44_v4 = vld [vmem:[%s858_s3 + $0x8] sm:$0xff]  ;;  %s701_s20 = smov 127   ;;  %v781_v5 = vld [vmem:[%s855_s0] sm:$0xff]  ;;  %vm56_vm0 = vcmask 908288  }
  0x14   :  { %52 = vrot.lane.b32.xlu0 %v43_v2, %s700_s16  ;;  %s702_s21 = smov 1   ;;  %s703_s22 = smov 15   ;;  %v786_v6 = vld [vmem:[%s855_s0 + $0x8] sm:$0xff]  ;;  %vm108_vm1 = vcmask 924672   ;;  %vm139_vm2 = vcmask 1039360   ;;  %vm156_vm3 = vcmask 7168  }
  0x15   :  { %s704_s26 = smov 17   ;;  %v618_v7 = vpack.i.bf16 %v786_v6, %v781_v5  ;;  %s705_s27 = smov 16   ;;  %vm125_vm4 = vcmask 121856   ;;  %v638_v39 = vpack.i.bf16 %v698_v0, %v786_v6  ;;  %vm73_vm5 = vcmask 138240   ;;  %v292_v50 = vld [vmem:[%s857_s2] sm:$0xff] }
  0x16   :  { %s706_s0 = smov 112   ;;  %v707_v47 = vmov 0   ;;  %vm92_vm6 = vcmask 130048   ;;  %vm237_vm7 = vcmask 916480   ;;  %vm298_vm8 = vcmask 588800  }
  0x17   :  { %106 = vrot.lane.b32.xlu1 %v46_v3, %s699_s15  ;;  %654 = vset.pattern.permute.xlu0 %v707_v47 }
  0x18   :  { %54 = vrot.lane.b32.xlu0 %v44_v4, %s700_s16  ;;  %653 = vset.pattern.permute.xlu1 %v707_v47  ;;  %v418_v47 = vld [vmem:[#allocation4 + $0x88] sm:$0xff] }
  0x1b   :  { %137 = vrot.lane.b32.xlu1 %v44_v4, %s701_s20 }
  0x1c   :  { %135 = vrot.lane.b32.xlu0 %v43_v2, %s701_s20 }
  0x1f   :  { %172 = vrot.lane.b32.xlu1 %v46_v3, %s702_s21 }
  0x20   :  { %170 = vrot.lane.b32.xlu0 %v45_v1, %s702_s21 }
  0x23   :  { %201 = vrot.lane.b32.xlu1 %v44_v4, %s703_s22 }
  0x24   :  { %199 = vrot.lane.b32.xlu0 %v43_v2, %s703_s22 }
  0x27   :  { %249 = vrot.lane.b32.xlu1 %v46_v3, %s704_s26 }
  0x28   :  { %247 = vrot.lane.b32.xlu0 %v45_v1, %s704_s26 }
  0x2b   :  { %619 = vrot.lane.b32.xlu1 %v618_v7, %s705_s27 }
  0x2f   :  { %86 = vrot.lane.b32.xlu1 %v698_v0, %s705_s27 }
  0x85   :  { %v105_v8 = vpop.permute.xlu1 %104 }
  0x86   :  { %v53_v9 = vpop.permute.xlu0 %52  ;;  %v113_v11 = vmul.f32 0.0, %v105_v8 }
  0x87   :  { %v61_v10 = vmul.f32 0.0, %v53_v9 }
  0x89   :  { %67 = vrot.lane.b32.xlu0 %v61_v10, %s704_s26  ;;  %v107_v12 = vpop.permute.xlu1 %106 }
  0x8a   :  { %v55_v13 = vpop.permute.xlu0 %54  ;;  %v109_v16 = vsel %vm108_vm1, %v105_v8, %v107_v12  ;;  %v115_v18 = vmul.f32 %v107_v12, %v786_v6 }
  0x8b   :  { %v57_v14 = vsel %vm56_vm0, %v53_v9, %v55_v13  ;;  %v63_v15 = vmul.f32 %v55_v13, %v786_v6  ;;  %v114_v22 = vmul.f32 %v109_v16, %v781_v5 }
  0x8c   :  { %v62_v17 = vmul.f32 %v57_v14, %v781_v5 }
  0x8d   :  { %119 = vrot.lane.b32.xlu0 %v113_v11, %s703_s22  ;;  %v138_v20 = vpop.permute.xlu1 %137  ;;  %v628_v30 = vpack.i.bf16 %v115_v18, %v114_v22 }
  0x8e   :  { %v623_v19 = vpack.i.bf16 %v63_v15, %v62_v17  ;;  %v136_v21 = vpop.permute.xlu0 %135  ;;  %v146_v23 = vmul.f32 %v138_v20, %v786_v6 }
  0x8f   :  { %v140_v24 = vsel %vm139_vm2, %v136_v21, %v138_v20  ;;  %v144_v25 = vmul.f32 0.0, %v136_v21 }
  0x90   :  { %v145_v26 = vmul.f32 %v140_v24, %v781_v5 }
  0x91   :  { %150 = vrot.lane.b32.xlu1 %v144_v25, %s702_s21  ;;  %624 = vrot.lane.b32.xlu0 %v623_v19, %s704_s26  ;;  %v173_v27 = vpop.permute.xlu1 %172 }
  0x92   :  { %v171_v28 = vpop.permute.xlu0 %170  ;;  %v633_v29 = vpack.i.bf16 %v146_v23, %v145_v26  ;;  %v180_v34 = vmul.f32 0.0, %v173_v27 }
  0x93   :  { %v174_v31 = vsel %vm156_vm3, %v171_v28, %v173_v27  ;;  %v178_v35 = vmul.f32 %v171_v28, %v781_v5 }
  0x94   :  { %v179_v36 = vmul.f32 %v174_v31, %v786_v6 }
  0x95   :  { %634 = vrot.lane.b32.xlu1 %v633_v29, %s702_s21  ;;  %629 = vrot.lane.b32.xlu0 %v628_v30, %s703_s22  ;;  %v202_v32 = vpop.permute.xlu1 %201 }
  0x96   :  { %v200_v33 = vpop.permute.xlu0 %199  ;;  %v209_v40 = vmul.f32 0.0, %v202_v32  ;;  %v643_v42 = vpack.i.bf16 %v180_v34, %v179_v36 }
  0x97   :  { %v207_v37 = vmul.f32 %v200_v33, %v781_v5  ;;  %v203_v38 = vsel %vm125_vm4, %v200_v33, %v202_v32 }
  0x98   :  { %v208_v41 = vmul.f32 %v203_v38, %v786_v6 }
  0x99   :  { %184 = vrot.lane.b32.xlu1 %v178_v35, %s701_s20  ;;  %213 = vrot.lane.b32.xlu0 %v207_v37, %s699_s15  ;;  %v250_v43 = vpop.permute.xlu1 %249 }
  0x9a   :  { %v248_v44 = vpop.permute.xlu0 %247  ;;  %v648_v46 = vpack.i.bf16 %v209_v40, %v208_v41  ;;  %v257_v48 = vmul.f32 0.0, %v250_v43 }
  0x9b   :  { %v251_v45 = vsel %vm73_vm5, %v248_v44, %v250_v43  ;;  %v255_v51 = vmul.f32 %v248_v44, %v781_v5 }
  0x9c   :  { %v256_v49 = vmul.f32 %v251_v45, %v786_v6  ;;  %v273_v45 = vld [vmem:[%s856_s1] sm:$0xff] }
  0x9d   :  { %639 = vrot.lane.b32.xlu1 %v638_v39, %s706_s0  ;;  %644 = vrot.lane.b32.xlu0 %v643_v42, %s701_s20  ;;  %v620_v52 = vpop.permute.xlu1 %619 }
  0x9e   :  { %v622_v56 = vunpack.i.h.bf16 %v620_v52  ;;  %v621_v57 = vunpack.i.l.bf16 %v620_v52  ;;  %v420_v52 = vld [vmem:[#allocation4 + $0x98] sm:$0xff] }
  0xa0   :  { %v94_v0 = vsel %vm92_vm6, %v621_v57, %v622_v56  ;;  %v404_v56 = vld [vmem:[#allocation4 + $0x18] sm:$0xff] }
  0xa1   :  { %231 = vrot.lane.b32.xlu1 %v781_v5, %s706_s0  ;;  %649 = vrot.lane.b32.xlu0 %v648_v46, %s699_s15  ;;  %v87_v54 = vpop.permute.xlu1 %86  ;;  %v417_v46 = vld [vmem:[#allocation4 + $0x80] sm:$0xff] }
  0xa2   :  { %v93_v62 = vsel %vm92_vm6, %v87_v54, %v621_v57  ;;  %v421_v57 = vld [vmem:[#allocation4 + $0xa0] sm:$0xff] }
  0xa5   :  { %265 = vrot.lane.b32.xlu1 %v257_v48, %s700_s16  ;;  %263 = vrot.lane.b32.xlu0 %v256_v49, %s700_s16  ;;  %v401_v48 = vld [vmem:[#allocation4] sm:$0xff]  ;;  %v573_v49 = vpack.c.bf16 %v418_v47, %v417_v46 }
  0xa7   :  { %574 = vmatprep.subr.bf16.mxu1 %v573_v49 }
  0xa9   :  { %261 = vrot.lane.b32.xlu0 %v255_v51, %s700_s16  ;;  %295 = vperm.xlu1 %653, %v292_v50   ;;  %v402_v50 = vld [vmem:[#allocation4 + $0x8] sm:$0xff]  ;;  %v419_v51 = vld [vmem:[#allocation4 + $0x90] sm:$0xff] }
  0xaa   :  { %v577_v54 = vpack.c.bf16 %v420_v52, %v419_v51 }
  0xfb   :  { %v68_v53 = vpop.permute.xlu0 %67 }
  0xff   :  { %v120_v55 = vpop.permute.xlu0 %119 }
 0x103   :  { %v151_v58 = vpop.permute.xlu1 %150  ;;  %v625_v59 = vpop.permute.xlu0 %624 }
 0x104   :  { %v627_v60 = vunpack.i.h.bf16 %v625_v59  ;;  %v626_v61 = vunpack.i.l.bf16 %v625_v59 }
 0x106   :  { %v75_v63 = vsel %vm73_vm5, %v626_v61, %v627_v60  ;;  %v74_v1 = vsel %vm73_vm5, %v68_v53, %v626_v61  ;;  %v575_v53 = vpack.c.bf16 %v402_v50, %v401_v48  ;;  %v405_v61 = vld [vmem:[#allocation4 + $0x20] sm:$0xff] }
 0x107   :  { %v635_v2 = vpop.permute.xlu1 %634  ;;  %v630_v3 = vpop.permute.xlu0 %629  ;;  %v557_v4 = vpack.c.bf16 %v94_v0, %v75_v63  ;;  %v559_v7 = vpack.c.bf16 %v93_v62, %v74_v1  ;;  %v406_v62 = vld [vmem:[#allocation4 + $0x28] sm:$0xff]  ;;  %v423_v63 = vld [vmem:[#allocation4 + $0xb0] sm:$0xff]  ;;  %v424_v0 = vld [vmem:[#allocation4 + $0xb8] sm:$0xff] }
 0x108   :  { %v637_v8 = vunpack.i.h.bf16 %v635_v2  ;;  %v636_v9 = vunpack.i.l.bf16 %v635_v2  ;;  %v632_v10 = vunpack.i.h.bf16 %v630_v3  ;;  %v631_v11 = vunpack.i.l.bf16 %v630_v3  ;;  %576 = vmatpush3.bf16.msra.mxu1 %v575_v53  ;;  %v407_v3 = vld [vmem:[#allocation4 + $0x30] sm:$0xff] }
 0x109   :  { %558 = vmatprep.subr.bf16.mxu0 %v557_v4  ;;  %578 = vmatprep.subr.bf16.mxu1 %v577_v54  ;;  %v583_v1 = vpack.c.bf16 %v406_v62, %v405_v61  ;;  %v585_v2 = vpack.c.bf16 %v424_v0, %v423_v63  ;;  %v408_v4 = vld [vmem:[#allocation4 + $0x38] sm:$0xff] }
 0x10a   :  { %560 = vmatpush1.bf16.msra.mxu0 %v559_v7  ;;  %v127_v12 = vsel %vm125_vm4, %v631_v11, %v632_v10  ;;  %v158_v13 = vsel %vm156_vm3, %v636_v9, %v637_v8  ;;  %v126_v14 = vsel %vm125_vm4, %v120_v55, %v631_v11  ;;  %v157_v15 = vsel %vm156_vm3, %v151_v58, %v636_v9  ;;  %v403_v55 = vld [vmem:[#allocation4 + $0x10] sm:$0xff]  ;;  %v422_v58 = vld [vmem:[#allocation4 + $0xa8] sm:$0xff]  ;;  %v425_v7 = vld [vmem:[#allocation4 + $0xc0] sm:$0xff] }
 0x10b   :  { %v185_v16 = vpop.permute.xlu1 %184  ;;  %v214_v17 = vpop.permute.xlu0 %213  ;;  %v561_v18 = vpack.c.bf16 %v158_v13, %v127_v12  ;;  %v563_v19 = vpack.c.bf16 %v157_v15, %v126_v14  ;;  %v579_v59 = vpack.c.bf16 %v404_v56, %v403_v55  ;;  %v581_v60 = vpack.c.bf16 %v422_v58, %v421_v57  ;;  %v426_v8 = vld [vmem:[#allocation4 + $0xc8] sm:$0xff]  ;;  %v409_v11 = vld [vmem:[#allocation4 + $0x40] sm:$0xff]  ;;  %v427_v13 = vld [vmem:[#allocation4 + $0xd0] sm:$0xff] }
 0x10c   :  { %v587_v9 = vpack.c.bf16 %v408_v4, %v407_v3  ;;  %v589_v10 = vpack.c.bf16 %v426_v8, %v425_v7  ;;  %v410_v12 = vld [vmem:[#allocation4 + $0x48] sm:$0xff]  ;;  %v428_v14 = vld [vmem:[#allocation4 + $0xd8] sm:$0xff] }
 0x10d   :  { %562 = vmatprep.subr.bf16.mxu0 %v561_v18  ;;  %580 = vmatpush3.bf16.msra.mxu1 %v579_v59  ;;  %v591_v15 = vpack.c.bf16 %v410_v12, %v409_v11  ;;  %v412_v18 = vld [vmem:[#allocation4 + $0x58] sm:$0xff] }
 0x10e   :  { %564 = vmatpush1.bf16.msra.mxu0 %v563_v19  ;;  %582 = vmatprep.subr.bf16.mxu1 %v581_v60  ;;  %v429_v19 = vld [vmem:[#allocation4 + $0xe0] sm:$0xff] }
 0x10f   :  { %v640_v20 = vpop.permute.xlu1 %639  ;;  %v645_v21 = vpop.permute.xlu0 %644 }
 0x110   :  { %v642_v22 = vunpack.i.h.bf16 %v640_v20  ;;  %v641_v23 = vunpack.i.l.bf16 %v640_v20  ;;  %v647_v24 = vunpack.i.h.bf16 %v645_v21  ;;  %v646_v25 = vunpack.i.l.bf16 %v645_v21  ;;  %v430_v20 = vld [vmem:[#allocation4 + $0xe8] sm:$0xff] }
 0x111   :  { %584 = vmatpush3.bf16.msra.mxu1 %v583_v1 }
 0x112   :  { %v191_v26 = vsel %vm139_vm2, %v646_v25, %v647_v24  ;;  %v190_v27 = vsel %vm139_vm2, %v185_v16, %v646_v25  ;;  %v239_v35 = vsel %vm237_vm7, %v641_v23, %v642_v22  ;;  %586 = vmatprep.subr.bf16.mxu1 %v585_v2  ;;  %v593_v16 = vpack.c.bf16 %v428_v14, %v427_v13  ;;  %v414_v24 = vld [vmem:[#allocation4 + $0x68] sm:$0xff]  ;;  %v431_v25 = vld [vmem:[#allocation4 + $0xf0] sm:$0xff] }
 0x113   :  { %v232_v28 = vpop.permute.xlu1 %231  ;;  %v650_v29 = vpop.permute.xlu0 %649  ;;  %v565_v30 = vpack.c.bf16 %v191_v26, %v786_v6  ;;  %v567_v31 = vpack.c.bf16 %v190_v27, %v781_v5  ;;  %v597_v22 = vpack.c.bf16 %v430_v20, %v429_v19  ;;  %v432_v26 = vld [vmem:[#allocation4 + $0xf8] sm:$0xff] }
 0x114   :  { %v238_v32 = vsel %vm237_vm7, %v232_v28, %v641_v23  ;;  %v652_v33 = vunpack.i.h.bf16 %v650_v29  ;;  %v651_v34 = vunpack.i.l.bf16 %v650_v29  ;;  %v413_v23 = vld [vmem:[#allocation4 + $0x60] sm:$0xff]  ;;  %v601_v28 = vpack.c.bf16 %v432_v26, %v431_v25  ;;  %v415_v29 = vld [vmem:[#allocation4 + $0x70] sm:$0xff] }
 0x115   :  { %566 = vmatprep.subr.bf16.mxu0 %v565_v30  ;;  %588 = vmatpush3.bf16.msra.mxu1 %v587_v9  ;;  %v599_v27 = vpack.c.bf16 %v414_v24, %v413_v23  ;;  %v416_v30 = vld [vmem:[#allocation4 + $0x78] sm:$0xff] }
 0x116   :  { %568 = vmatpush1.bf16.msra.mxu0 %v567_v31  ;;  %v220_v36 = vsel %vm108_vm1, %v651_v34, %v652_v33  ;;  %v219_v37 = vsel %vm108_vm1, %v214_v17, %v651_v34  ;;  %590 = vmatprep.subr.bf16.mxu1 %v589_v10  ;;  %v411_v17 = vld [vmem:[#allocation4 + $0x50] sm:$0xff]  ;;  %v603_v31 = vpack.c.bf16 %v416_v30, %v415_v29 }
 0x117   :  { %v266_v38 = vpop.permute.xlu1 %265  ;;  %v264_v39 = vpop.permute.xlu0 %263  ;;  %v569_v40 = vpack.c.bf16 %v239_v35, %v220_v36  ;;  %v571_v41 = vpack.c.bf16 %v238_v32, %v219_v37  ;;  %v595_v21 = vpack.c.bf16 %v412_v18, %v411_v17 }
 0x118   :  { %v268_v42 = vsel %vm56_vm0, %v264_v39, %v266_v38 }
 0x119   :  { %570 = vmatprep.subr.bf16.mxu0 %v569_v40  ;;  %592 = vmatpush3.bf16.msra.mxu1 %v591_v15 }
 0x11a   :  { %572 = vmatpush1.bf16.msra.mxu0 %v571_v41  ;;  %594 = vmatprep.subr.bf16.mxu1 %v593_v16 }
 0x11b   :  { %v262_v43 = vpop.permute.xlu0 %261  ;;  %318 = vmatprep.subr.mxu0 %v268_v42 }
 0x11c   :  { %v267_v44 = vsel %vm56_vm0, %v262_v43, %v264_v39 }
 0x11d   :  { %596 = vmatpush3.bf16.msra.mxu1 %v595_v21 }
 0x11e   :  { %319 = vmatpush1.msra.mxu0 %v267_v44  ;;  %598 = vmatprep.subr.bf16.mxu1 %v597_v22 }
 0x11f   :  { %516 = vmatmul.mubr.msk.f32.vlgmr.msra.gmra.mrb[0].mxu0 %vm298_vm8, %v273_v45 }
 0x121   :  { %600 = vmatpush3.bf16.msra.mxu1 %v599_v27 }
 0x122   :  { %602 = vmatprep.subr.bf16.mxu1 %v601_v28 }
 0x125   :  { %604 = vmatpush3.bf16.msra.mxu1 %v603_v31 }
 0x128   :  { %v296_v32 = vpop.permute.xlu1 %295 }
 0x1f2   :  { %v368_v33 = vpop.f32.mrb[0].mxu0 }
 0x1f3   :  { %v369_v34 = vadd.f32 %v368_v33, %v296_v32  ;;  %v370_v35 = vpop.f32.mrb[1].mxu0 }
 0x1f4   :  { %v371_v36 = vadd.f32 %v370_v35, %v296_v32 }
 0x1f5   :  { %v517_v37 = vmul.f32 -1.442695, %v369_v34 }
 0x1f6   :  { %v518_v38 = vmul.f32 -1.442695, %v371_v36 }
 0x1f7   :  { %655 = vpow2.f32 %v517_v37 }
 0x1f8   :  { %657 = vpow2.f32 %v518_v38 }
 0x201   :  { %v656_v39 = vpop.eup %655 }
 0x202   :  { %v658_v40 = vpop.eup %657  ;;  %v379_v41 = vadd.f32 1.0, %v656_v39 }
 0x203   :  { %v380_v42 = vadd.f32 1.0, %v658_v40 }
 0x204   :  { %659 = vrcp.f32 %v379_v41 }
 0x205   :  { %661 = vrcp.f32 %v380_v42 }
 0x20e   :  { %v660_v43 = vpop.eup %659 }
 0x20f   :  { %v662_v44 = vpop.eup %661  ;;  %v385_v45 = vmul.f32 %v660_v43, %v781_v5  ;;  %v521_v5 = vld [vmem:[%s860_s5] ss:$0 sm:$0xff] }
 0x210   :  { %v386_v46 = vmul.f32 %v662_v44, %v786_v6 }
 0x211   :  { %v519_v47 = vmul.f32 -1.442695, %v385_v45 }
 0x212   :  { %v520_v48 = vmul.f32 -1.442695, %v386_v46 }
 0x213   :  { %663 = vpow2.f32 %v519_v47 }
 0x214   :  { %665 = vpow2.f32 %v520_v48 }
 0x21d   :  { %v664_v49 = vpop.eup %663 }
 0x21e   :  { %v666_v50 = vpop.eup %665  ;;  %v393_v51 = vadd.f32 1.0, %v664_v49 }
 0x21f   :  { %v394_v52 = vadd.f32 1.0, %v666_v50 }
 0x220   :  { %667 = vrcp.f32 %v393_v51 }
 0x221   :  { %669 = vrcp.f32 %v394_v52 }
 0x22a   :  { %v668_v53 = vpop.eup %667 }
 0x22b   :  { %v670_v54 = vpop.eup %669  ;;  %v399_v56 = vmul.f32 %v668_v53, %v385_v45 }
 0x22c   :  { %v400_v55 = vmul.f32 %v670_v54, %v386_v46 }
 0x22e   :  { %504 = vmatprep.mubr.f32.mxu1 %v400_v55 }
 0x22f   :  { %505 = vmatmul.mubr.f32.vlgmr.msra.gmra.mrb[0].mxu1 %v399_v56 }
 0x302   :  { %v554_v57 = vpop.f32.mrb[0].mxu1 }
 0x303   :  { %v555_v6 = vpop.f32.mrb[1].mxu1 }
 0x304   :  { %v556_v58 = vadd.f32 %v555_v6, %v554_v57 }
 0x306   :  { %v507_v59 = vadd.f32 %v556_v58, %v521_v5 }
 0x308   :  { %510 = vst [vmem:[%s861_s6] sm:$0xff] %v507_v59 }
 0x309   :  { %515 = vsyncpa [#allocation5], 1 }

</bundles_post_ra>
